<compile_context>
chip_gen: v6e
topology: v6e:2x2x1
jax: 0.10.0
libtpu: 0.0.40
codegen_flags: <defaults>
</compile_context>

<pallas_src>
import functools

import jax
import jax.numpy as jnp
from jax.experimental import pallas as pl
from jax.experimental.pallas import tpu as pltpu

_EPS = 1e-8
_LANES = 128
_SUBLANES = 8
_MAX_PACK = 16          # only pack when D >= 128 // _MAX_PACK = 8
_MAX_TILE_ROWS = 2048   # per-step overhead is already <1% here


# --------------------------------------------------------------------------- #
# Kernel
# --------------------------------------------------------------------------- #
def _row_sum(x, d):
    """Per-row sum along the lane axis of a (tile_n, d) f32 block.

    When d is a multiple of 128 we first add the 128-lane columns together on
    the VPU (static 128-aligned slices are layout-preserving, no relayout) and
    finish with a single 128-wide cross-lane (XLU) reduce, instead of a
    full-width XLU reduction — insurance against the XLU slot becoming the
    binding unit at v7x's 3.2 TB/s HBM feed rate.
    """
    if d > _LANES and d % _LANES == 0 and d // _LANES <= 64:
        acc = x[:, 0:_LANES]
        for c in range(1, d // _LANES):
            acc = acc + x[:, c * _LANES:(c + 1) * _LANES]
        return jnp.sum(acc, axis=1, keepdims=True)
    return jnp.sum(x, axis=1, keepdims=True)


def _cosine_loss_kernel(yt_ref, yp_ref, out_ref, *, n_valid_rows, tile_n, seg_d, pack):
    i = pl.program_id(0)

    # Upcast to f32 (v5e VPU has no bf16; callers may pass bf16 to halve HBM bytes).
    yt = yt_ref[...].astype(jnp.float32)
    yp = yp_ref[...].astype(jnp.float32)

    p12 = yp * yt
    p1 = yp * yp
    p2 = yt * yt

    # Validity of rows in this (possibly ragged) tile.  MUST stay a select, not
    # a multiply-by-mask: garbage rows can produce Inf/NaN through rsqrt and a
    # multiply would propagate them into the partial sum.
    row = i * tile_n + jax.lax.broadcasted_iota(jnp.int32, (tile_n, 1), 0)
    row_ok = row < n_valid_rows

    eps2 = _EPS * _EPS

    if pack == 1:
        # Natural (N, D) layout.
        d = yt.shape[1]
        w12 = _row_sum(p12, d)
        w1 = _row_sum(p1, d)
        w2 = _row_sum(p2, d)
        cos = w12 * jax.lax.rsqrt(jnp.maximum(w1 * w2, eps2))
        partial = jnp.sum(jnp.where(row_ok, cos, 0.0))
    else:
        # Packed small-D layout: each 128-lane row holds `pack` logical rows of
        # width seg_d; do a segmented in-row reduction per logical row.
        lane = jax.lax.broadcasted_iota(jnp.int32, (tile_n, _LANES), 1)
        acc = jnp.zeros((tile_n, 1), jnp.float32)
        for s in range(pack):
            m = (lane >= s * seg_d) & (lane < (s + 1) * seg_d)
            w12 = jnp.sum(jnp.where(m, p12, 0.0), axis=1, keepdims=True)
            w1 = jnp.sum(jnp.where(m, p1, 0.0), axis=1, keepdims=True)
            w2 = jnp.sum(jnp.where(m, p2, 0.0), axis=1, keepdims=True)
            cos_s = w12 * jax.lax.rsqrt(jnp.maximum(w1 * w2, eps2))
            # Wrapper zero-padding gives w12 = 0 -> cos_s = 0 exactly, so only
            # ragged-tile garbage rows need masking (select form, see above).
            acc = acc + jnp.where(row_ok, cos_s, 0.0)
        partial = jnp.sum(acc)

    # One lane-dense (8,128) partial-sum block per tile (keeps the grid axis
    # "parallel" so v7x can shard it across both TensorCores).
    out_ref[...] = jnp.full(out_ref.shape, partial, dtype=out_ref.dtype)


# --------------------------------------------------------------------------- #
# Sizing helpers
# --------------------------------------------------------------------------- #
def _vmem_limit_bytes():
    """Generation-aware VMEM limit driving both the tile picker and Mosaic."""
    cap = 64 * 1024 * 1024  # conservative fallback = v7x per-core physical VMEM
    get_info = getattr(pltpu, "get_tpu_info", None)
    if get_info is not None:
        try:
            cap = int(get_info().vmem_capacity_bytes)
        except Exception:
            pass
    # ~75% of physical VMEM, capped at 64 MiB: ~64 MiB on the 128 MiB
    # v5e/v6e parts, ~48 MiB headroom-safe on v7x's 64 MiB parts.
    return min(cap * 3 // 4, 64 * 1024 * 1024)


def _pick_tile_n(kernel_rows, kernel_cols, itemsize, vmem_budget_bytes):
    # VMEM footprint: 2 inputs x 2 pipeline buffers x tile_n x lane-padded D x itemsize.
    d_pad = max(pl.cdiv(kernel_cols, _LANES) * _LANES, _LANES)
    per_row = 2 * 2 * d_pad * itemsize
    tile = max(_SUBLANES, vmem_budget_bytes // per_row)
    tile = min(tile, _MAX_TILE_ROWS)

    n_blocks = pl.cdiv(kernel_rows, _SUBLANES)  # number of 8-row groups
    if n_blocks >= 2:
        # Guarantee grid >= 2 so v7x's two TensorCores both get work
        # (negligible cost on single-TC v5e/v6e: one extra ~0.35 us step).
        tile = min(tile, ((n_blocks + 1) // 2) * _SUBLANES)
    else:
        tile = min(tile, _SUBLANES)

    return max(_SUBLANES, (tile // _SUBLANES) * _SUBLANES)


# --------------------------------------------------------------------------- #
# Wrapper
# --------------------------------------------------------------------------- #
def cosine_similarity_loss(y_true, y_pred, *, tile_n=None):
    """Pallas equivalent of CosineSimilarityLoss().forward(y_true, y_pred)."""
    assert y_true.shape == y_pred.shape and y_true.ndim == 2
    n_rows, n_feat = y_true.shape

    # --- layout decision: pack small feature dims into full 128-lane rows ----
    pack = 1
    if n_feat < _LANES and _LANES % n_feat == 0 and (_LANES // n_feat) <= _MAX_PACK:
        pack = _LANES // n_feat

    if pack > 1:
        n_pad = pl.cdiv(n_rows, pack) * pack
        if n_pad != n_rows:
            # Zero rows contribute exactly 0 to the cosine sum; divide by the
            # true n_rows at the end.
            y_true = jnp.pad(y_true, ((0, n_pad - n_rows), (0, 0)))
            y_pred = jnp.pad(y_pred, ((0, n_pad - n_rows), (0, 0)))
        # Row-major reshape: packed row r = original rows [r*pack, (r+1)*pack).
        yt_k = y_true.reshape(n_pad // pack, _LANES)
        yp_k = y_pred.reshape(n_pad // pack, _LANES)
        kernel_rows, kernel_cols = n_pad // pack, _LANES
    else:
        yt_k, yp_k = y_true, y_pred
        kernel_rows, kernel_cols = n_rows, n_feat

    # --- sizing ---------------------------------------------------------------
    vmem_limit = _vmem_limit_bytes()
    itemsize = max(jnp.dtype(yt_k.dtype).itemsize, jnp.dtype(yp_k.dtype).itemsize)
    if tile_n is None:
        # Picker budget = compiler limit minus a little slack for output blocks
        # and compiler scratch, so the two numbers agree by construction.
        tile_n = _pick_tile_n(kernel_rows, kernel_cols, itemsize,
                              vmem_limit - (2 << 20))
    grid = pl.cdiv(kernel_rows, tile_n)

    kernel = functools.partial(
        _cosine_loss_kernel,
        n_valid_rows=kernel_rows, tile_n=tile_n, seg_d=n_feat, pack=pack)

    in_bytes = (yt_k.size * jnp.dtype(yt_k.dtype).itemsize
                + yp_k.size * jnp.dtype(yp_k.dtype).itemsize)
    out_bytes = grid * _SUBLANES * _LANES * 4

    # NOTE: default double-buffering (pl.Buffered(2)) is kept; with two
    # symmetric streaming inputs a third buffer only helps if a trace shows
    # exposed DMA at the chosen tile size.
    partials = pl.pallas_call(
        kernel,
        out_shape=jax.ShapeDtypeStruct((grid, _SUBLANES, _LANES), jnp.float32),
        grid=(grid,),
        in_specs=[
            pl.BlockSpec((tile_n, kernel_cols), lambda i: (i, 0)),
            pl.BlockSpec((tile_n, kernel_cols), lambda i: (i, 0)),
        ],
        out_specs=pl.BlockSpec((1, _SUBLANES, _LANES), lambda i: (i, 0, 0)),
        compiler_params=pltpu.CompilerParams(
            dimension_semantics=("parallel",),
            vmem_limit_bytes=vmem_limit,
        ),
        cost_estimate=pl.CostEstimate(
            flops=6 * n_rows * n_feat,
            transcendentals=n_rows,
            bytes_accessed=in_bytes + out_bytes,
        ),
    )(yt_k, yp_k)

    # Tiny cross-tile reduction + mean over the *true* N in plain JAX.
    return jnp.sum(partials[:, 0, 0]) / n_rows


# --------------------------------------------------------------------------- #
# Self-test
# --------------------------------------------------------------------------- #
def _reference(y_true, y_pred):
    w12 = jnp.sum(y_pred * y_true, axis=1)
    w1 = jnp.sum(y_pred * y_pred, axis=1)
    w2 = jnp.sum(y_true * y_true, axis=1)
    return jnp.mean(w12 / jnp.sqrt(jnp.maximum(w1 * w2, _EPS * _EPS)))


if __name__ == "__main__":
    key = jax.random.PRNGKey(0)

    # 1) Small feature dim -> packed layout (D=32 packs 4 rows/lane-row;
    #    N=10 forces wrapper zero-padding + ragged-tile masking).
    k1, k2, key = jax.random.split(key, 3)[0], jax.random.split(key, 3)[1], jax.random.split(key, 3)[2]
    yt = jax.random.normal(k1, (10, 32), dtype=jnp.float32)
    yp = jax.random.normal(k2, (10, 32), dtype=jnp.float32)
    out = cosine_similarity_loss(yt, yp)
    jax.block_until_ready(out)
    ref = _reference(yt, yp)
    assert jnp.allclose(out, ref, atol=1e-5, rtol=1e-5), (out, ref)

    # 2) Natural layout, D not a multiple of 128, forced small tile ->
    #    multi-tile grid with a ragged last tile.
    k1, k2, key = jax.random.split(key, 3)
    yt = jax.random.normal(k1, (20, 160), dtype=jnp.float32)
    yp = jax.random.normal(k2, (20, 160), dtype=jnp.float32)
    out = cosine_similarity_loss(yt, yp, tile_n=8)
    jax.block_until_ready(out)
    ref = _reference(yt, yp)
    assert jnp.allclose(out, ref, atol=1e-5, rtol=1e-5), (out, ref)

    # 3) D multiple of 128 -> VPU column adds + single cross-lane reduce;
    #    auto tile picker guarantees grid >= 2 here.
    k1, k2, key = jax.random.split(key, 3)
    yt = jax.random.normal(k1, (16, 256), dtype=jnp.float32)
    yp = jax.random.normal(k2, (16, 256), dtype=jnp.float32)
    out = cosine_similarity_loss(yt, yp)
    jax.block_until_ready(out)
    ref = _reference(yt, yp)
    assert jnp.allclose(out, ref, atol=1e-5, rtol=1e-5), (out, ref)

    print("KERNEL_OK")
</pallas_src>

<mosaic_0001>
module attributes {stable_mosaic.version = 11 : i64} {
  func.func @_cosine_loss_kernel(%arg0: i32, %arg1: memref<8x128xf32, #tpu.memory_space<vmem>>, %arg2: memref<8x128xf32, #tpu.memory_space<vmem>>, %arg3: memref<1x8x128xf32, #tpu.memory_space<vmem>>) attributes {dimension_semantics = [#tpu.dimension_semantics<parallel>], iteration_bounds = array<i64: 1>, scalar_prefetch = 0 : i64, scratch_operands = 0 : i64, tpu.core_type = #tpu.core_type<tc>, window_params = [{transform_indices = @transform_0, window_bounds = array<i64: 8, 128>}, {transform_indices = @transform_1, window_bounds = array<i64: 8, 128>}, {transform_indices = @transform_2, window_bounds = array<i64: 1, 8, 128>}]} {
    %c0 = arith.constant 0 : index
    %c0_0 = arith.constant 0 : index
    %0 = vector.load %arg1[%c0, %c0_0] : memref<8x128xf32, #tpu.memory_space<vmem>>, vector<8x128xf32>
    %c0_1 = arith.constant 0 : index
    %c0_2 = arith.constant 0 : index
    %1 = vector.load %arg2[%c0_1, %c0_2] : memref<8x128xf32, #tpu.memory_space<vmem>>, vector<8x128xf32>
    %2 = arith.mulf %1, %0 : vector<8x128xf32>
    %3 = arith.mulf %1, %1 : vector<8x128xf32>
    %4 = arith.mulf %0, %0 : vector<8x128xf32>
    %c8_i32 = arith.constant 8 : i32
    %5 = arith.muli %arg0, %c8_i32 : i32
    %6 = tpu.iota {dimensions = array<i32: 0>} : vector<8x1xi32>
    %7 = vector.broadcast %5 : i32 to vector<8x1xi32>
    %8 = arith.addi %7, %6 : vector<8x1xi32>
    %c3_i32 = arith.constant 3 : i32
    %9 = vector.broadcast %c3_i32 : i32 to vector<8x1xi32>
    %10 = arith.cmpi slt, %8, %9 : vector<8x1xi32>
    %11 = tpu.iota {dimensions = array<i32: 1>} : vector<8x128xi32>
    %cst = arith.constant 0.000000e+00 : f32
    %12 = vector.broadcast %cst : f32 to vector<8x1xf32>
    %c0_i32 = arith.constant 0 : i32
    %13 = vector.broadcast %c0_i32 : i32 to vector<8x128xi32>
    %14 = arith.cmpi sge, %11, %13 : vector<8x128xi32>
    %c32_i32 = arith.constant 32 : i32
    %15 = vector.broadcast %c32_i32 : i32 to vector<8x128xi32>
    %16 = arith.cmpi slt, %11, %15 : vector<8x128xi32>
    %17 = arith.andi %14, %16 : vector<8x128xi1>
    %cst_3 = arith.constant 0.000000e+00 : f32
    %18 = vector.broadcast %cst_3 : f32 to vector<8x128xf32>
    %19 = arith.select %17, %2, %18 : vector<8x128xi1>, vector<8x128xf32>
    %cst_4 = arith.constant dense<0.000000e+00> : vector<8xf32>
    %20 = vector.multi_reduction <add>, %19, %cst_4 [1] : vector<8x128xf32> to vector<8xf32>
    %21 = vector.shape_cast %20 : vector<8xf32> to vector<8x1xf32>
    %cst_5 = arith.constant 0.000000e+00 : f32
    %22 = vector.broadcast %cst_5 : f32 to vector<8x128xf32>
    %23 = arith.select %17, %3, %22 : vector<8x128xi1>, vector<8x128xf32>
    %cst_6 = arith.constant dense<0.000000e+00> : vector<8xf32>
    %24 = vector.multi_reduction <add>, %23, %cst_6 [1] : vector<8x128xf32> to vector<8xf32>
    %25 = vector.shape_cast %24 : vector<8xf32> to vector<8x1xf32>
    %cst_7 = arith.constant 0.000000e+00 : f32
    %26 = vector.broadcast %cst_7 : f32 to vector<8x128xf32>
    %27 = arith.select %17, %4, %26 : vector<8x128xi1>, vector<8x128xf32>
    %cst_8 = arith.constant dense<0.000000e+00> : vector<8xf32>
    %28 = vector.multi_reduction <add>, %27, %cst_8 [1] : vector<8x128xf32> to vector<8xf32>
    %29 = vector.shape_cast %28 : vector<8xf32> to vector<8x1xf32>
    %30 = arith.mulf %25, %29 : vector<8x1xf32>
    %cst_9 = arith.constant 1.000000e-16 : f32
    %31 = vector.broadcast %cst_9 : f32 to vector<8x1xf32>
    %32 = arith.maximumf %30, %31 : vector<8x1xf32>
    %33 = math.rsqrt %32 : vector<8x1xf32>
    %34 = arith.mulf %21, %33 : vector<8x1xf32>
    %cst_10 = arith.constant 0.000000e+00 : f32
    %35 = vector.broadcast %cst_10 : f32 to vector<8x1xf32>
    %36 = arith.select %10, %34, %35 : vector<8x1xi1>, vector<8x1xf32>
    %37 = arith.addf %12, %36 : vector<8x1xf32>
    %c32_i32_11 = arith.constant 32 : i32
    %38 = vector.broadcast %c32_i32_11 : i32 to vector<8x128xi32>
    %39 = arith.cmpi sge, %11, %38 : vector<8x128xi32>
    %c64_i32 = arith.constant 64 : i32
    %40 = vector.broadcast %c64_i32 : i32 to vector<8x128xi32>
    %41 = arith.cmpi slt, %11, %40 : vector<8x128xi32>
    %42 = arith.andi %39, %41 : vector<8x128xi1>
    %cst_12 = arith.constant 0.000000e+00 : f32
    %43 = vector.broadcast %cst_12 : f32 to vector<8x128xf32>
    %44 = arith.select %42, %2, %43 : vector<8x128xi1>, vector<8x128xf32>
    %cst_13 = arith.constant dense<0.000000e+00> : vector<8xf32>
    %45 = vector.multi_reduction <add>, %44, %cst_13 [1] : vector<8x128xf32> to vector<8xf32>
    %46 = vector.shape_cast %45 : vector<8xf32> to vector<8x1xf32>
    %cst_14 = arith.constant 0.000000e+00 : f32
    %47 = vector.broadcast %cst_14 : f32 to vector<8x128xf32>
    %48 = arith.select %42, %3, %47 : vector<8x128xi1>, vector<8x128xf32>
    %cst_15 = arith.constant dense<0.000000e+00> : vector<8xf32>
    %49 = vector.multi_reduction <add>, %48, %cst_15 [1] : vector<8x128xf32> to vector<8xf32>
    %50 = vector.shape_cast %49 : vector<8xf32> to vector<8x1xf32>
    %cst_16 = arith.constant 0.000000e+00 : f32
    %51 = vector.broadcast %cst_16 : f32 to vector<8x128xf32>
    %52 = arith.select %42, %4, %51 : vector<8x128xi1>, vector<8x128xf32>
    %cst_17 = arith.constant dense<0.000000e+00> : vector<8xf32>
    %53 = vector.multi_reduction <add>, %52, %cst_17 [1] : vector<8x128xf32> to vector<8xf32>
    %54 = vector.shape_cast %53 : vector<8xf32> to vector<8x1xf32>
    %55 = arith.mulf %50, %54 : vector<8x1xf32>
    %cst_18 = arith.constant 1.000000e-16 : f32
    %56 = vector.broadcast %cst_18 : f32 to vector<8x1xf32>
    %57 = arith.maximumf %55, %56 : vector<8x1xf32>
    %58 = math.rsqrt %57 : vector<8x1xf32>
    %59 = arith.mulf %46, %58 : vector<8x1xf32>
    %cst_19 = arith.constant 0.000000e+00 : f32
    %60 = vector.broadcast %cst_19 : f32 to vector<8x1xf32>
    %61 = arith.select %10, %59, %60 : vector<8x1xi1>, vector<8x1xf32>
    %62 = arith.addf %37, %61 : vector<8x1xf32>
    %c64_i32_20 = arith.constant 64 : i32
    %63 = vector.broadcast %c64_i32_20 : i32 to vector<8x128xi32>
    %64 = arith.cmpi sge, %11, %63 : vector<8x128xi32>
    %c96_i32 = arith.constant 96 : i32
    %65 = vector.broadcast %c96_i32 : i32 to vector<8x128xi32>
    %66 = arith.cmpi slt, %11, %65 : vector<8x128xi32>
    %67 = arith.andi %64, %66 : vector<8x128xi1>
    %cst_21 = arith.constant 0.000000e+00 : f32
    %68 = vector.broadcast %cst_21 : f32 to vector<8x128xf32>
    %69 = arith.select %67, %2, %68 : vector<8x128xi1>, vector<8x128xf32>
    %cst_22 = arith.constant dense<0.000000e+00> : vector<8xf32>
    %70 = vector.multi_reduction <add>, %69, %cst_22 [1] : vector<8x128xf32> to vector<8xf32>
    %71 = vector.shape_cast %70 : vector<8xf32> to vector<8x1xf32>
    %cst_23 = arith.constant 0.000000e+00 : f32
    %72 = vector.broadcast %cst_23 : f32 to vector<8x128xf32>
    %73 = arith.select %67, %3, %72 : vector<8x128xi1>, vector<8x128xf32>
    %cst_24 = arith.constant dense<0.000000e+00> : vector<8xf32>
    %74 = vector.multi_reduction <add>, %73, %cst_24 [1] : vector<8x128xf32> to vector<8xf32>
    %75 = vector.shape_cast %74 : vector<8xf32> to vector<8x1xf32>
    %cst_25 = arith.constant 0.000000e+00 : f32
    %76 = vector.broadcast %cst_25 : f32 to vector<8x128xf32>
    %77 = arith.select %67, %4, %76 : vector<8x128xi1>, vector<8x128xf32>
    %cst_26 = arith.constant dense<0.000000e+00> : vector<8xf32>
    %78 = vector.multi_reduction <add>, %77, %cst_26 [1] : vector<8x128xf32> to vector<8xf32>
    %79 = vector.shape_cast %78 : vector<8xf32> to vector<8x1xf32>
    %80 = arith.mulf %75, %79 : vector<8x1xf32>
    %cst_27 = arith.constant 1.000000e-16 : f32
    %81 = vector.broadcast %cst_27 : f32 to vector<8x1xf32>
    %82 = arith.maximumf %80, %81 : vector<8x1xf32>
    %83 = math.rsqrt %82 : vector<8x1xf32>
    %84 = arith.mulf %71, %83 : vector<8x1xf32>
    %cst_28 = arith.constant 0.000000e+00 : f32
    %85 = vector.broadcast %cst_28 : f32 to vector<8x1xf32>
    %86 = arith.select %10, %84, %85 : vector<8x1xi1>, vector<8x1xf32>
    %87 = arith.addf %62, %86 : vector<8x1xf32>
    %c96_i32_29 = arith.constant 96 : i32
    %88 = vector.broadcast %c96_i32_29 : i32 to vector<8x128xi32>
    %89 = arith.cmpi sge, %11, %88 : vector<8x128xi32>
    %c128_i32 = arith.constant 128 : i32
    %90 = vector.broadcast %c128_i32 : i32 to vector<8x128xi32>
    %91 = arith.cmpi slt, %11, %90 : vector<8x128xi32>
    %92 = arith.andi %89, %91 : vector<8x128xi1>
    %cst_30 = arith.constant 0.000000e+00 : f32
    %93 = vector.broadcast %cst_30 : f32 to vector<8x128xf32>
    %94 = arith.select %92, %2, %93 : vector<8x128xi1>, vector<8x128xf32>
    %cst_31 = arith.constant dense<0.000000e+00> : vector<8xf32>
    %95 = vector.multi_reduction <add>, %94, %cst_31 [1] : vector<8x128xf32> to vector<8xf32>
    %96 = vector.shape_cast %95 : vector<8xf32> to vector<8x1xf32>
    %cst_32 = arith.constant 0.000000e+00 : f32
    %97 = vector.broadcast %cst_32 : f32 to vector<8x128xf32>
    %98 = arith.select %92, %3, %97 : vector<8x128xi1>, vector<8x128xf32>
    %cst_33 = arith.constant dense<0.000000e+00> : vector<8xf32>
    %99 = vector.multi_reduction <add>, %98, %cst_33 [1] : vector<8x128xf32> to vector<8xf32>
    %100 = vector.shape_cast %99 : vector<8xf32> to vector<8x1xf32>
    %cst_34 = arith.constant 0.000000e+00 : f32
    %101 = vector.broadcast %cst_34 : f32 to vector<8x128xf32>
    %102 = arith.select %92, %4, %101 : vector<8x128xi1>, vector<8x128xf32>
    %cst_35 = arith.constant dense<0.000000e+00> : vector<8xf32>
    %103 = vector.multi_reduction <add>, %102, %cst_35 [1] : vector<8x128xf32> to vector<8xf32>
    %104 = vector.shape_cast %103 : vector<8xf32> to vector<8x1xf32>
    %105 = arith.mulf %100, %104 : vector<8x1xf32>
    %cst_36 = arith.constant 1.000000e-16 : f32
    %106 = vector.broadcast %cst_36 : f32 to vector<8x1xf32>
    %107 = arith.maximumf %105, %106 : vector<8x1xf32>
    %108 = math.rsqrt %107 : vector<8x1xf32>
    %109 = arith.mulf %96, %108 : vector<8x1xf32>
    %cst_37 = arith.constant 0.000000e+00 : f32
    %110 = vector.broadcast %cst_37 : f32 to vector<8x1xf32>
    %111 = arith.select %10, %109, %110 : vector<8x1xi1>, vector<8x1xf32>
    %112 = arith.addf %87, %111 : vector<8x1xf32>
    %113 = vector.shape_cast %112 : vector<8x1xf32> to vector<1x8x1xf32>
    %cst_38 = arith.constant dense<0.000000e+00> : vector<1xf32>
    %114 = vector.multi_reduction <add>, %113, %cst_38 [1, 2] : vector<1x8x1xf32> to vector<1xf32>
    %115 = vector.shape_cast %114 : vector<1xf32> to vector<1x1x1xf32>
    %116 = vector.extract %115[0, 0, 0] : f32 from vector<1x1x1xf32>
    %117 = vector.broadcast %116 : f32 to vector<1x8x128xf32>
    %c0_39 = arith.constant 0 : index
    %c0_40 = arith.constant 0 : index
    %c0_41 = arith.constant 0 : index
    %118 = vector.load %arg3[%c0_39, %c0_40, %c0_41] : memref<1x8x128xf32, #tpu.memory_space<vmem>>, vector<1x8x128xf32>
    tpu.vector_store %arg3[%c0_39, %c0_40, %c0_41], %117 {strides = array<i32>} : memref<1x8x128xf32, #tpu.memory_space<vmem>>, vector<1x8x128xf32>,
    return
  }
  func.func @transform_0(%arg0: i32) -> (i32, i32) {
    %c0_i32 = arith.constant 0 : i32
    %c0_i32_0 = arith.constant 0 : i32
    return %arg0, %c0_i32 : i32, i32
  }
  func.func @transform_1(%arg0: i32) -> (i32, i32) {
    %c0_i32 = arith.constant 0 : i32
    %c0_i32_0 = arith.constant 0 : i32
    return %arg0, %c0_i32 : i32, i32
  }
  func.func @transform_2(%arg0: i32) -> (i32, i32, i32) {
    %c0_i32 = arith.constant 0 : i32
    %c0_i32_0 = arith.constant 0 : i32
    %c0_i32_1 = arith.constant 0 : i32
    return %arg0, %c0_i32, %c0_i32_0 : i32, i32, i32
  }
}

</mosaic_0001>

<bundles_post_ra>
// kernel: tpu_custom_call.1
= control target key start
LH: loop header
LB: loop body
LE: loop exit
PB: predicated region body
PF: predicated region fallthrough
CT: control target
= control target key end

     0   :  { %7 = vsyncpa [#allocation3], 0  ;;  %s287_s0 = inlined_call_operand.hbm [shape: f32[3,128], index: 0, kind: input, shape index: {}]   ;;  %s288_s1 = inlined_call_operand.hbm [shape: f32[3,128], index: 1, kind: input, shape index: {}]   ;;  %s289_s2 = inlined_call_operand.hbm [shape: f32[1,8,128], index: 2, kind: output, shape index: {}]  }
   0x1   :  { %8 = vsyncpa [#allocation6], 0 }
   0x2   :  { %9 = vsyncpa [#allocation4], 0 }
   0x3   :  { %14 = vsyncadd [#allocation3], 64  ;;  %s235_s9 = smov [#allocation2]  }
   0x4   :  { %s15_s10 = sshll.u32 %s235_s9, 4  ;;  %s16_s10 = int_to_ptr.vmem [resolvable:$true] %s15_s10 }
   0x5   :  { %s177_s11 = scalar_lea.vmem %s16_s10, 64  ;;  %s181_s12 = scalar_lea.vmem %s16_s10, 128 }
   0x6   :  { %p178_p0 = scmp.ne.s32.totalorder %s16_s10, %s177_s11  ;;  %p182_p1 = scmp.lt.s32.totalorder %s16_s10, %s16_s10 }
   0x7   :  { %p183_p2 = scmp.lt.s32.totalorder %s181_s12, %s177_s11 }
   0x9   :  { %p184_p3 = por %p183_p2, %p182_p1 }
   0xb   :  { %p185_p4 = pnand %p184_p3, %p178_p0 }
   0xd   :  { %188 = shalt.err (!%p185_p4)
}
   0xe   :  { %s236_s13 = smov 64   ;;  %s237_s14 = smov 4  }
   0xf   :  { %21 = dma.hbm_to_vmem [thread:$0]  %s287_s0, 64, %s16_s10, [#allocation3], %s236_s13, %s236_s13, %s237_s14  }
  0x10   :  { %26 = vsyncadd [#allocation6], 64  ;;  %s238_s17 = smov [#allocation5]  }
  0x11   :  { %s27_s18 = sshll.u32 %s238_s17, 4  ;;  %s28_s18 = int_to_ptr.vmem [resolvable:$true] %s27_s18 }
  0x12   :  { %s197_s19 = scalar_lea.vmem %s28_s18, 64  ;;  %s201_s20 = scalar_lea.vmem %s28_s18, 128 }
  0x13   :  { %p198_p5 = scmp.ne.s32.totalorder %s28_s18, %s197_s19  ;;  %p202_p6 = scmp.lt.s32.totalorder %s28_s18, %s28_s18 }
  0x14   :  { %p203_p7 = scmp.lt.s32.totalorder %s201_s20, %s197_s19 }
  0x16   :  { %p204_p8 = por %p203_p7, %p202_p6 }
  0x18   :  { %p205_p9 = pnand %p204_p8, %p198_p5 }
  0x1a   :  { %208 = shalt.err (!%p205_p9)
}
  0x1b   :  { %33 = dma.hbm_to_vmem [thread:$0]  %s288_s1, 64, %s28_s18, [#allocation6], %s236_s13, %s236_s13, %s237_s14  }
  0x1c   :  { %229 = dma.done.wait [#allocation3], 128  }
  0x1d   :  { %230 = vsyncadd [#allocation3], 4294967168 }
  0x1e   :  { %231 = dma.done.wait [#allocation6], 128  }
  0x1f   :  { %232 = vsyncadd [#allocation6], 4294967168  ;;  %v46_v0 = vlaneseq  ;;  %v41_v2 = vld [vmem:[#allocation5] sm:$0xff]  ;;  %v40_v4 = vld [vmem:[#allocation2] sm:$0xff]  ;;  %vm125_vm9 = vcmask 7168   ;;  %s239_s0 = smov [#allocation7]  }
  0x20   :  { %v43_v5 = vmul.f32 %v41_v2, %v41_v2  ;;  %v44_v6 = vmul.f32 %v40_v4, %v40_v4  ;;  %v42_v16 = vmul.f32 %v41_v2, %v40_v4  ;;  %s144_s1 = sshll.u32 %s239_s0, 4  ;;  %s145_s1 = int_to_ptr.vmem [resolvable:$true] %s144_s1 }
  0x21   :  { %v52_v1 = vand.u32 127, %v46_v0  ;;  %v47_v38 = vshrl.u32 %v46_v0, 7  ;;  %s209_s24 = scalar_lea.vmem %s145_s1, 128  ;;  %p214_p11 = scmp.lt.s32.totalorder %s145_s1, %s145_s1 }
  0x22   :  { %p210_p10 = scmp.ne.s32.totalorder %s145_s1, %s209_s24  ;;  %p215_p12 = scmp.lt.s32.totalorder %s209_s24, %s209_s24 }
  0x23   :  { %vm71_vm0 = vcmp.ge.s32.totalorder %v52_v1, 32  ;;  %vm72_vm1 = vcmp.lt.s32.totalorder %v52_v1, 64  ;;  %vm54_vm3 = vcmp.lt.s32.totalorder %v52_v1, 32  ;;  %vm89_vm4 = vcmp.ge.s32.totalorder %v52_v1, 64 }
  0x24   :  { %vm261_vm2 = vmand %vm71_vm0, %vm72_vm1  ;;  %v59_v8 = vsel %vm54_vm3, %v43_v5, 0.0  ;;  %vm90_vm5 = vcmp.lt.s32.totalorder %v52_v1, 96  ;;  %v62_v10 = vsel %vm54_vm3, %v44_v6, 0.0  ;;  %vm107_vm7 = vcmp.ge.s32.totalorder %v52_v1, 96  ;;  %p216_p13 = por %p215_p12, %p214_p11 }
  0x25   :  { %v77_v7 = vsel %vm261_vm2, %v43_v5, 0.0  ;;  %60 = vadd.xlane.f32.xlu0 %v59_v8  ;;  %v80_v9 = vsel %vm261_vm2, %v44_v6, 0.0  ;;  %vm271_vm6 = vmand %vm89_vm4, %vm90_vm5  ;;  %v116_v14 = vsel %vm107_vm7, %v44_v6, 0.0  ;;  %v113_v15 = vsel %vm107_vm7, %v43_v5, 0.0 }
  0x26   :  { %78 = vadd.xlane.f32.xlu1 %v77_v7  ;;  %v98_v12 = vsel %vm271_vm6, %v44_v6, 0.0  ;;  %v95_v13 = vsel %vm271_vm6, %v43_v5, 0.0  ;;  %v74_v17 = vsel %vm261_vm2, %v42_v16, 0.0  ;;  %v56_v18 = vsel %vm54_vm3, %v42_v16, 0.0  ;;  %p217_p0 = pnand %p216_p13, %p210_p10 }
  0x27   :  { %v92_v19 = vsel %vm271_vm6, %v42_v16, 0.0  ;;  %v110_v20 = vsel %vm107_vm7, %v42_v16, 0.0  ;;  %vm50_vm8 = vcmp.lt.s32.totalorder %v47_v38, 3 }
  0x29   :  { %63 = vadd.xlane.f32.xlu0 %v62_v10 }
  0x2a   :  { %81 = vadd.xlane.f32.xlu1 %v80_v9 }
  0x2d   :  { %96 = vadd.xlane.f32.xlu0 %v95_v13 }
  0x2e   :  { %99 = vadd.xlane.f32.xlu1 %v98_v12 }
  0x31   :  { %114 = vadd.xlane.f32.xlu0 %v113_v15 }
  0x32   :  { %117 = vadd.xlane.f32.xlu1 %v116_v14 }
  0x35   :  { %57 = vadd.xlane.f32.xlu0 %v56_v18 }
  0x36   :  { %75 = vadd.xlane.f32.xlu1 %v74_v17 }
  0x39   :  { %93 = vadd.xlane.f32.xlu0 %v92_v19 }
  0x3a   :  { %111 = vadd.xlane.f32.xlu1 %v110_v20 }
  0xae   :  { %v61_v22 = vpop.xlane.xlu0 %60 }
  0xaf   :  { %v79_v21 = vpop.xlane.xlu1 %78 }
  0xb2   :  { %v64_v24 = vpop.xlane.xlu0 %63 }
  0xb3   :  { %v82_v23 = vpop.xlane.xlu1 %81  ;;  %v65_v26 = vmul.f32 %v64_v24, %v61_v22 }
  0xb4   :  { %v83_v25 = vmul.f32 %v82_v23, %v79_v21 }
  0xb5   :  { %v66_v28 = vmax.f32 %v65_v26, 1e-16 }
  0xb6   :  { %v84_v27 = vmax.f32 %v83_v25, 1e-16  ;;  %v97_v30 = vpop.xlane.xlu0 %96 }
  0xb7   :  { %v100_v29 = vpop.xlane.xlu1 %99 }
  0xb8   :  { %161 = vrsqrt.f32 %v84_v27  ;;  %v101_v31 = vmul.f32 %v100_v29, %v97_v30 }
  0xb9   :  { %163 = vrsqrt.f32 %v66_v28 }
  0xba   :  { %v102_v32 = vmax.f32 %v101_v31, 1e-16  ;;  %v115_v34 = vpop.xlane.xlu0 %114 }
  0xbb   :  { %v118_v33 = vpop.xlane.xlu1 %117 }
  0xbc   :  { %165 = vrsqrt.f32 %v102_v32  ;;  %v119_v35 = vmul.f32 %v118_v33, %v115_v34 }
  0xbe   :  { %v120_v36 = vmax.f32 %v119_v35, 1e-16  ;;  %v58_v37 = vpop.xlane.xlu0 %57 }
  0xbf   :  { %v76_v39 = vpop.xlane.xlu1 %75 }
  0xc0   :  { %167 = vrsqrt.f32 %v120_v36 }
  0xc2   :  { %v94_v44 = vpop.xlane.xlu0 %93 }
  0xc3   :  { %v112_v49 = vpop.xlane.xlu1 %111 }
  0xc5   :  { %v162_v40 = vpop.eup %161 }
  0xc6   :  { %v164_v41 = vpop.eup %163  ;;  %v86_v42 = vmul.f32 %v162_v40, %v76_v39 }
  0xc7   :  { %v68_v43 = vmul.f32 %v164_v41, %v58_v37 }
  0xc8   :  { %v87_v46 = vsel %vm50_vm8, %v86_v42, 0.0 }
  0xc9   :  { %v166_v45 = vpop.eup %165  ;;  %v69_v47 = vsel %vm50_vm8, %v68_v43, 0.0 }
  0xca   :  { %v104_v48 = vmul.f32 %v166_v45, %v94_v44  ;;  %v88_v52 = vadd.f32 %v87_v46, %v69_v47 }
  0xcc   :  { %v105_v50 = vsel %vm50_vm8, %v104_v48, 0.0 }
  0xcd   :  { %v168_v51 = vpop.eup %167  ;;  %v106_v54 = vadd.f32 %v105_v50, %v88_v52 }
  0xce   :  { %v122_v53 = vmul.f32 %v168_v51, %v112_v49 }
  0xd0   :  { %v123_v55 = vsel %vm50_vm8, %v122_v53, 0.0 }
  0xd1   :  { %v124_v56 = vadd.f32 %v123_v55, %v106_v54 }
  0xd3   :  { %v126_v57 = vsel %vm125_vm9, %v124_v56, 0.0 }
  0xd4   :  { %127 = vadd.xlane.f32.xlu0 %v126_v57 }
 0x15d   :  { %v128_v58 = vpop.xlane.xlu0 %127 }
 0x15e   :  { %v129_v59 = vrot.slane %v128_v58, 4 }
 0x160   :  { %v130_v60 = vadd.f32 %v129_v59, %v128_v58 }
 0x162   :  { %v131_v61 = vrot.slane %v130_v60, 2 }
 0x164   :  { %v132_v62 = vadd.f32 %v131_v61, %v130_v60 }
 0x166   :  { %v133_v63 = vrot.slane %v132_v62, 1 }
 0x168   :  { %v134_v0 = vadd.f32 %v133_v63, %v132_v62 }
 0x16a   :  { %154 = vpush %v134_v0 }
 0x19b   :  { %s155_s23 = spop %154 }
 0x19c   :  { %v136_v1 = vstv %s155_s23 }
 0x19d   :  { %137 = vst [vmem:[#allocation7] sm:$0xff] %v136_v1 }
 0x19e   :  { %220 = shalt.err (!%p217_p0)
}
 0x19f   :  { %147 = dma.vmem_to_hbm [thread:$0]  %s145_s1, 128, %s289_s2, [#allocation4]  }
 0x1a0   :  { %233 = dma.done.wait [#allocation4], 128  }
 0x1a1   :  { %234 = vsyncadd [#allocation4], 4294967168 }
 0x1a2   :  { %151 = vsyncpa [#allocation3], 1 }
 0x1a3   :  { %152 = vsyncpa [#allocation6], 1 }
 0x1a4   :  { %153 = vsyncpa [#allocation4], 1 }

</bundles_post_ra>
